<compile_context>
chip_gen: v7x
topology: tpu7x:2x2x1
jax: 0.10.0
libtpu: 0.0.40
codegen_flags: <defaults>
</compile_context>

<pallas_src>
import jax
import jax.numpy as jnp
from jax.experimental import pallas as pl
from jax.experimental.pallas import tpu as pltpu


_LANE = 128           # TPU lane width
_D1 = 256             # fc1 out
_D2 = 128             # fc2 out
_D3 = 64              # fc3 out (unpadded)
_D3P = _LANE          # fc3 out padded to lane width
_OUT_PAD = _LANE      # final layer padded to lane width (action_dim <= 128)

# Row offsets into the packed weight slab (w2 | w3_pad | w4_pad), shape (512, 128).
_W2_OFF = 0
_W3_OFF = _D1                     # 256
_W4_OFF = _D1 + _D2               # 384
_WP_ROWS = _D1 + _D2 + _D3P       # 512

# Lane offsets into the packed bias slab (b1 | b2 | b3_pad | b4_pad), shape (1, 640).
_B1_OFF = 0
_B2_OFF = _D1                     # 256
_B3_OFF = _D1 + _D2               # 384
_B4_OFF = _D1 + _D2 + _D3P        # 512
_B_COLS = _D1 + _D2 + _D3P + _OUT_PAD   # 640


def _round_up(x, m):
    return (x + m - 1) // m * m


# ---------------------------------------------------------------------------
# Kernels
# ---------------------------------------------------------------------------

def _net_body(x, w1_ref, wp_ref, b_ref):
    """Fused 4-layer MLP. x: (tb, state_dim) bf16 -> (tb, _OUT_PAD) f32.

    Dots run in bf16 on the MXU with f32 accumulation; bias-add/ReLU in f32.
    Static slices into the packed weight/bias slabs are free (8/128 aligned).
    """
    # fc1 + ReLU
    h = jnp.dot(x, w1_ref[...], preferred_element_type=jnp.float32)
    h = jnp.maximum(h + b_ref[:, _B1_OFF:_B1_OFF + _D1], 0.0).astype(jnp.bfloat16)

    # fc2 + ReLU
    h = jnp.dot(h, wp_ref[_W2_OFF:_W2_OFF + _D1, :],
                preferred_element_type=jnp.float32)
    h = jnp.maximum(h + b_ref[:, _B2_OFF:_B2_OFF + _D2], 0.0).astype(jnp.bfloat16)

    # fc3 + ReLU (output padded 64 -> 128, padded columns stay exactly 0)
    h = jnp.dot(h, wp_ref[_W3_OFF:_W3_OFF + _D2, :],
                preferred_element_type=jnp.float32)
    h = jnp.maximum(h + b_ref[:, _B3_OFF:_B3_OFF + _D3P], 0.0).astype(jnp.bfloat16)

    # out (no activation), lane-dense padded width
    q = jnp.dot(h, wp_ref[_W4_OFF:_W4_OFF + _D3P, :],
                preferred_element_type=jnp.float32)
    return q + b_ref[:, _B4_OFF:_B4_OFF + _OUT_PAD]


def _mlp_kernel(x_ref, w1_ref, wp_ref, b_ref, out_ref):
    out_ref[...] = _net_body(x_ref[...], w1_ref, wp_ref, b_ref).astype(out_ref.dtype)


def _dual_mlp_kernel(x_ref,
                     w1o_ref, wpo_ref, bo_ref,
                     w1t_ref, wpt_ref, bt_ref,
                     out_ref):
    """Online net and target net evaluated on the same (stacked) batch in one
    kernel; results land in one lane-dense (tb, 256) output slab."""
    x = x_ref[...]
    out_ref[:, 0:_OUT_PAD] = _net_body(x, w1o_ref, wpo_ref, bo_ref).astype(out_ref.dtype)
    out_ref[:, _OUT_PAD:2 * _OUT_PAD] = _net_body(x, w1t_ref, wpt_ref, bt_ref).astype(out_ref.dtype)


# ---------------------------------------------------------------------------
# Wrappers
# ---------------------------------------------------------------------------

def _row_map(i):
    return (i, 0)


def _const_map(i):
    return (0, 0)


def _vmem_spec():
    return pl.BlockSpec(memory_space=pltpu.MemorySpace.VMEM)


def _run(kernel, x_bf16, weight_args, out_cols, tile_batch):
    """Dispatch: gridless single block if the batch fits, else batch-tiled grid
    with weight-resident (constant index_map) operands."""
    batch, state_dim = x_bf16.shape

    if batch <= tile_batch:
        # Gridless path: one block, no per-step pipeline machinery.  At the
        # default tile_batch=4096 the full footprint is ~15 MB, well inside
        # even v7x's default scoped VMEM.
        return pl.pallas_call(
            kernel,
            out_shape=jax.ShapeDtypeStruct((batch, out_cols), jnp.float32),
            in_specs=[_vmem_spec() for _ in range(1 + len(weight_args))],
            out_specs=_vmem_spec(),
        )(x_bf16, *weight_args)

    # Large batch: tile the batch axis.  Tiles are equal-sized, so any batch
    # <= 2*tile_batch lands on exactly 2 parallel tiles (one per TC on v7x).
    num_tiles = -(-batch // tile_batch)
    tb = _round_up(-(-batch // num_tiles), 8)
    padded = tb * num_tiles
    if padded != batch:
        x_bf16 = jnp.pad(x_bf16, ((0, padded - batch), (0, 0)))

    in_specs = [pl.BlockSpec((tb, state_dim), _row_map)]
    in_specs += [pl.BlockSpec(a.shape, _const_map) for a in weight_args]

    q = pl.pallas_call(
        kernel,
        out_shape=jax.ShapeDtypeStruct((padded, out_cols), jnp.float32),
        grid=(num_tiles,),
        in_specs=in_specs,
        out_specs=pl.BlockSpec((tb, out_cols), _row_map),
        compiler_params=pltpu.CompilerParams(
            dimension_semantics=("parallel",)),
    )(x_bf16, *weight_args)
    return q[:batch]


def pack_params(params):
    """Pack raw (in, out)-layout params into the kernel's fused operands.

    Call once per weight update, NOT per forward call.
    Returns dict with:
      w1: (state_dim, 256) bf16
      wp: (512, 128) bf16  -- w2 | w3 (cols padded to 128) | w4 (rows+cols padded)
      b : (1, 640)  f32    -- b1 | b2 | b3 (padded) | b4 (padded)
    """
    action_dim = params["w4"].shape[1]
    assert action_dim <= _OUT_PAD, (
        "TODO(synk): action_dim > 128 needs a wider lane-padded output slab")

    w3p = jnp.pad(params["w3"], ((0, 0), (0, _D3P - _D3)))
    w4p = jnp.pad(params["w4"], ((0, _D3P - _D3), (0, _OUT_PAD - action_dim)))
    wp = jnp.concatenate([params["w2"], w3p, w4p], axis=0).astype(jnp.bfloat16)

    b3p = jnp.pad(params["b3"], ((0, 0), (0, _D3P - _D3)))
    b4p = jnp.pad(params["b4"], ((0, 0), (0, _OUT_PAD - action_dim)))
    b = jnp.concatenate([params["b1"], params["b2"], b3p, b4p],
                        axis=1).astype(jnp.float32)

    return {
        "w1": params["w1"].astype(jnp.bfloat16),
        "wp": wp,
        "b": b,
        "action_dim": action_dim,
    }


def net_forward(x, packed, *, tile_batch=4096):
    """Single-net forward: x (batch, state_dim) f32 -> (batch, action_dim) f32."""
    x = x.astype(jnp.bfloat16)   # half the x DMA bytes; cast done once in wrapper
    q = _run(_mlp_kernel, x,
             (packed["w1"], packed["wp"], packed["b"]),
             _OUT_PAD, tile_batch)
    return q[:, :packed["action_dim"]]


def ddqn_fused_forward(s, s_next, packed_online, packed_target, *, tile_batch=4096):
    """One pallas_call for the whole DDQN evaluation step.

    Stacks s and s' along the batch axis and runs both weight sets, returning
      (Q_online(s), Q_online(s'), Q_target(s')).
    """
    batch = s.shape[0]
    a = packed_online["action_dim"]
    x = jnp.concatenate([s, s_next], axis=0).astype(jnp.bfloat16)
    out = _run(_dual_mlp_kernel, x,
               (packed_online["w1"], packed_online["wp"], packed_online["b"],
                packed_target["w1"], packed_target["wp"], packed_target["b"]),
               2 * _OUT_PAD, tile_batch)
    q_online_s = out[:batch, :a]
    q_online_next = out[batch:, :a]
    q_target_next = out[batch:, _OUT_PAD:_OUT_PAD + a]
    return q_online_s, q_online_next, q_target_next


# ---------------------------------------------------------------------------
# Init + pure-JAX reference
# ---------------------------------------------------------------------------

def init_params(key, state_dim=8, action_dim=4):
    """Deterministic init matching PyTorch nn.Linear's default
    (uniform(-1/sqrt(fan_in), 1/sqrt(fan_in))); weights stored (in, out), f32."""
    dims = [(state_dim, _D1), (_D1, _D2), (_D2, _D3), (_D3, action_dim)]
    params = {}
    for i, (fan_in, fan_out) in enumerate(dims, start=1):
        key, kw, kb = jax.random.split(key, 3)
        bound = 1.0 / (fan_in ** 0.5)
        params[f"w{i}"] = jax.random.uniform(
            kw, (fan_in, fan_out), dtype=jnp.float32, minval=-bound, maxval=bound)
        params[f"b{i}"] = jax.random.uniform(
            kb, (1, fan_out), dtype=jnp.float32, minval=-bound, maxval=bound)
    return params


def net_forward_ref(x, params):
    """Pure-JAX reference mirroring the kernel's bf16-operand / f32-accum
    numerics, for correctness checking."""
    def layer(h, w, b, relu):
        y = jnp.dot(h.astype(jnp.bfloat16), w.astype(jnp.bfloat16),
                    preferred_element_type=jnp.float32) + b.astype(jnp.float32)
        return jnp.maximum(y, 0.0) if relu else y

    h = layer(x, params["w1"], params["b1"], True)
    h = layer(h, params["w2"], params["b2"], True)
    h = layer(h, params["w3"], params["b3"], True)
    return layer(h, params["w4"], params["b4"], False)


# ---------------------------------------------------------------------------
# Self-test
# ---------------------------------------------------------------------------

if __name__ == "__main__":
    key = jax.random.PRNGKey(0)
    k_on, k_tg, kx1, kx2, kx3, kx4 = jax.random.split(key, 6)

    state_dim, action_dim = 8, 4
    params_on = init_params(k_on, state_dim=state_dim, action_dim=action_dim)
    params_tg = init_params(k_tg, state_dim=state_dim, action_dim=action_dim)
    packed_on = pack_params(params_on)
    packed_tg = pack_params(params_tg)

    # 1) Small act()-style batch -> gridless single-block path.
    x_small = jax.random.normal(kx1, (8, state_dim), dtype=jnp.float32)
    q_small = jax.block_until_ready(net_forward(x_small, packed_on))
    ref_small = net_forward_ref(x_small, params_on)
    assert q_small.shape == (8, action_dim)
    assert jnp.allclose(q_small, ref_small, atol=2e-3, rtol=2e-3), \
        "small-batch mismatch vs reference"

    # 2) Fused DDQN step: online Q(s), online Q(s'), target Q(s') in ONE call.
    s = jax.random.normal(kx2, (32, state_dim), dtype=jnp.float32)
    s_next = jax.random.normal(kx3, (32, state_dim), dtype=jnp.float32)
    q_on_s, q_on_n, q_tg_n = jax.block_until_ready(
        ddqn_fused_forward(s, s_next, packed_on, packed_tg))
    assert q_on_s.shape == (32, action_dim)
    assert jnp.allclose(q_on_s, net_forward_ref(s, params_on),
                        atol=2e-3, rtol=2e-3), "fused online Q(s) mismatch"
    assert jnp.allclose(q_on_n, net_forward_ref(s_next, params_on),
                        atol=2e-3, rtol=2e-3), "fused online Q(s') mismatch"
    assert jnp.allclose(q_tg_n, net_forward_ref(s_next, params_tg),
                        atol=2e-3, rtol=2e-3), "fused target Q(s') mismatch"

    # 3) Grid path (exercised with a small tile override; real batches up to
    #    4096 stay gridless). Non-divisible batch exercises the padding logic.
    x_big = jax.random.normal(kx4, (200, state_dim), dtype=jnp.float32)
    q_big = jax.block_until_ready(net_forward(x_big, packed_on, tile_batch=64))
    assert q_big.shape == (200, action_dim)
    assert jnp.allclose(q_big, net_forward_ref(x_big, params_on),
                        atol=2e-3, rtol=2e-3), "tiled-batch mismatch vs reference"

    print("KERNEL_OK")
</pallas_src>

<mosaic_0001>
module attributes {stable_mosaic.version = 11 : i64} {
  func.func @_mlp_kernel(%arg0: memref<8x8xbf16, #tpu.memory_space<vmem>>, %arg1: memref<8x256xbf16, #tpu.memory_space<vmem>>, %arg2: memref<512x128xbf16, #tpu.memory_space<vmem>>, %arg3: memref<1x640xf32, #tpu.memory_space<vmem>>, %arg4: memref<8x128xf32, #tpu.memory_space<vmem>>) attributes {dimension_semantics = [], scalar_prefetch = 0 : i64, scratch_operands = 0 : i64, tpu.core_type = #tpu.core_type<tc>} {
    %c0 = arith.constant 0 : index
    %c0_0 = arith.constant 0 : index
    %0 = vector.load %arg0[%c0, %c0_0] : memref<8x8xbf16, #tpu.memory_space<vmem>>, vector<8x8xbf16>
    %c0_1 = arith.constant 0 : index
    %c0_2 = arith.constant 0 : index
    %1 = vector.load %arg1[%c0_1, %c0_2] : memref<8x256xbf16, #tpu.memory_space<vmem>>, vector<8x256xbf16>
    %cst = arith.constant dense<0.000000e+00> : vector<8x256xf32>
    %2 = tpu.matmul %0, %1, %cst {dimension_numbers = #tpu.dot_dimension_numbers<[1], [0], [0], [1], [0, 0, 1, 1], [], []>} : vector<8x8xbf16>, vector<8x256xbf16>, vector<8x256xf32> -> vector<8x256xf32>
    %c0_3 = arith.constant 0 : index
    %c0_4 = arith.constant 0 : index
    %3 = vector.load %arg3[%c0_3, %c0_4] : memref<1x640xf32, #tpu.memory_space<vmem>>, vector<1x256xf32>
    %4 = vector.broadcast %3 : vector<1x256xf32> to vector<8x256xf32>
    %5 = arith.addf %2, %4 : vector<8x256xf32>
    %cst_5 = arith.constant 0.000000e+00 : f32
    %6 = vector.broadcast %cst_5 : f32 to vector<8x256xf32>
    %7 = arith.maximumf %5, %6 : vector<8x256xf32>
    %8 = arith.truncf %7 : vector<8x256xf32> to vector<8x256xbf16>
    %c0_6 = arith.constant 0 : index
    %c0_7 = arith.constant 0 : index
    %9 = vector.load %arg2[%c0_6, %c0_7] : memref<512x128xbf16, #tpu.memory_space<vmem>>, vector<256x128xbf16>
    %cst_8 = arith.constant dense<0.000000e+00> : vector<8x128xf32>
    %10 = tpu.matmul %8, %9, %cst_8 {dimension_numbers = #tpu.dot_dimension_numbers<[1], [0], [0], [1], [0, 0, 1, 1], [], []>} : vector<8x256xbf16>, vector<256x128xbf16>, vector<8x128xf32> -> vector<8x128xf32>
    %c0_9 = arith.constant 0 : index
    %c256 = arith.constant 256 : index
    %11 = vector.load %arg3[%c0_9, %c256] : memref<1x640xf32, #tpu.memory_space<vmem>>, vector<1x128xf32>
    %12 = vector.broadcast %11 : vector<1x128xf32> to vector<8x128xf32>
    %13 = arith.addf %10, %12 : vector<8x128xf32>
    %cst_10 = arith.constant 0.000000e+00 : f32
    %14 = vector.broadcast %cst_10 : f32 to vector<8x128xf32>
    %15 = arith.maximumf %13, %14 : vector<8x128xf32>
    %16 = arith.truncf %15 : vector<8x128xf32> to vector<8x128xbf16>
    %c256_11 = arith.constant 256 : index
    %c0_12 = arith.constant 0 : index
    %17 = vector.load %arg2[%c256_11, %c0_12] : memref<512x128xbf16, #tpu.memory_space<vmem>>, vector<128x128xbf16>
    %cst_13 = arith.constant dense<0.000000e+00> : vector<8x128xf32>
    %18 = tpu.matmul %16, %17, %cst_13 {dimension_numbers = #tpu.dot_dimension_numbers<[1], [0], [0], [1], [0, 0, 1, 1], [], []>} : vector<8x128xbf16>, vector<128x128xbf16>, vector<8x128xf32> -> vector<8x128xf32>
    %c0_14 = arith.constant 0 : index
    %c384 = arith.constant 384 : index
    %19 = vector.load %arg3[%c0_14, %c384] : memref<1x640xf32, #tpu.memory_space<vmem>>, vector<1x128xf32>
    %20 = vector.broadcast %19 : vector<1x128xf32> to vector<8x128xf32>
    %21 = arith.addf %18, %20 : vector<8x128xf32>
    %cst_15 = arith.constant 0.000000e+00 : f32
    %22 = vector.broadcast %cst_15 : f32 to vector<8x128xf32>
    %23 = arith.maximumf %21, %22 : vector<8x128xf32>
    %24 = arith.truncf %23 : vector<8x128xf32> to vector<8x128xbf16>
    %c384_16 = arith.constant 384 : index
    %c0_17 = arith.constant 0 : index
    %25 = vector.load %arg2[%c384_16, %c0_17] : memref<512x128xbf16, #tpu.memory_space<vmem>>, vector<128x128xbf16>
    %cst_18 = arith.constant dense<0.000000e+00> : vector<8x128xf32>
    %26 = tpu.matmul %24, %25, %cst_18 {dimension_numbers = #tpu.dot_dimension_numbers<[1], [0], [0], [1], [0, 0, 1, 1], [], []>} : vector<8x128xbf16>, vector<128x128xbf16>, vector<8x128xf32> -> vector<8x128xf32>
    %c0_19 = arith.constant 0 : index
    %c512 = arith.constant 512 : index
    %27 = vector.load %arg3[%c0_19, %c512] : memref<1x640xf32, #tpu.memory_space<vmem>>, vector<1x128xf32>
    %28 = vector.broadcast %27 : vector<1x128xf32> to vector<8x128xf32>
    %29 = arith.addf %26, %28 : vector<8x128xf32>
    %c0_20 = arith.constant 0 : index
    %c0_21 = arith.constant 0 : index
    %30 = vector.load %arg4[%c0_20, %c0_21] : memref<8x128xf32, #tpu.memory_space<vmem>>, vector<8x128xf32>
    tpu.vector_store %arg4[%c0_20, %c0_21], %29 {strides = array<i32>} : memref<8x128xf32, #tpu.memory_space<vmem>>, vector<8x128xf32>,
    return
  }
}

</mosaic_0001>

<bundles_post_ra>
// kernel: tpu_custom_call.1
= control target key start
LH: loop header
LB: loop body
LE: loop exit
PB: predicated region body
PF: predicated region fallthrough
CT: control target
= control target key end

     0   :  { %9 = vsyncpa [#allocation3], 0  ;;  %s917_s0 = inlined_call_operand.hbm [shape: bf16[8,8], index: 0, kind: input, shape index: {}]   ;;  %s918_s1 = inlined_call_operand.hbm [shape: bf16[8,256], index: 1, kind: input, shape index: {}]   ;;  %s919_s2 = inlined_call_operand.hbm [shape: bf16[512,128], index: 2, kind: input, shape index: {}]   ;;  %s920_s3 = inlined_call_operand.vmem [shape: f32[1,640], index: 3, kind: input, shape index: {}]   ;;  %s921_s4 = inlined_call_operand.hbm [shape: f32[8,128], index: 4, kind: output, shape index: {}]  }
   0x1   :  { %10 = vsyncpa [#allocation6], 0 }
   0x2   :  { %11 = vsyncpa [#allocation4], 0  ;;  %s805_s15 = smov [#allocation5]   ;;  %s806_s17 = smov [#allocation2]  }
   0x3   :  { %s28_s16 = sshll.u32 %s805_s15, 4  ;;  %s18_s18 = sshll.u32 %s806_s17, 4  ;;  %s29_s16 = int_to_ptr.vmem [resolvable:$true] %s28_s16  ;;  %s19_s18 = int_to_ptr.vmem [resolvable:$true] %s18_s18 }
   0x4   :  { %s711_s21 = scalar_lea.hbm %s918_s1, 128 }
   0x5   :  { %p712_p0 = scmp.ne.s32.totalorder %s918_s1, %s711_s21  ;;  %p715_p1 = scmp.lt.u32.totalorder %s711_s21, %s918_s1 }
   0x7   :  { %p717_p2 = pnand %p715_p1, %p712_p0 }
   0x9   :  { %720 = shalt.err (!%p717_p2)
}
   0xa   :  { %s721_s26 = scalar_lea.vmem %s29_s16, 128  ;;  %p726_p4 = scmp.lt.s32.totalorder %s29_s16, %s29_s16 }
   0xb   :  { %p722_p3 = scmp.ne.s32.totalorder %s29_s16, %s721_s26  ;;  %p727_p5 = scmp.lt.s32.totalorder %s721_s26, %s721_s26 }
   0xd   :  { %p728_p6 = por %p727_p5, %p726_p4 }
   0xf   :  { %p729_p7 = pnand %p728_p6, %p722_p3 }
  0x11   :  { %732 = shalt.err (!%p729_p7)
}
  0x12   :  { %31 = dma.hbm_to_vmem [thread:$0]  %s918_s1, 128, %s29_s16, [#allocation6]  }
  0x13   :  { %s733_s5 = scalar_lea.hbm %s917_s0, 64 }
  0x14   :  { %p734_p8 = scmp.ne.s32.totalorder %s917_s0, %s733_s5  ;;  %p737_p9 = scmp.lt.u32.totalorder %s733_s5, %s917_s0 }
  0x16   :  { %p739_p10 = pnand %p737_p9, %p734_p8 }
  0x18   :  { %742 = shalt.err (!%p739_p10)
}
  0x19   :  { %s743_s10 = scalar_lea.vmem %s19_s18, 64  ;;  %p748_p12 = scmp.lt.s32.totalorder %s19_s18, %s19_s18 }
  0x1a   :  { %p744_p11 = scmp.ne.s32.totalorder %s19_s18, %s743_s10  ;;  %p749_p13 = scmp.lt.s32.totalorder %s743_s10, %s743_s10 }
  0x1c   :  { %p750_p0 = por %p749_p13, %p748_p12 }
  0x1e   :  { %p751_p1 = pnand %p750_p0, %p744_p11 }
  0x20   :  { %754 = shalt.err (!%p751_p1)
}
  0x21   :  { %21 = dma.hbm_to_vmem [thread:$0]  %s917_s0, 64, %s19_s18, [#allocation3]  }
  0x22   :  { %s807_s12 = smov [#allocation7]   ;;  %s755_s16 = scalar_lea.hbm %s919_s2, 4096 }
  0x23   :  { %s37_s13 = sshll.u32 %s807_s12, 4  ;;  %p756_p2 = scmp.ne.s32.totalorder %s919_s2, %s755_s16  ;;  %s38_s13 = int_to_ptr.vmem [resolvable:$true] %s37_s13 }
  0x24   :  { %p759_p3 = scmp.lt.u32.totalorder %s755_s16, %s919_s2 }
  0x26   :  { %p761_p4 = pnand %p759_p3, %p756_p2 }
  0x28   :  { %764 = shalt.err (!%p761_p4)
}
  0x29   :  { %s765_s22 = scalar_lea.vmem %s38_s13, 4096  ;;  %p770_p6 = scmp.lt.s32.totalorder %s38_s13, %s38_s13 }
  0x2a   :  { %p766_p5 = scmp.ne.s32.totalorder %s38_s13, %s765_s22  ;;  %p771_p7 = scmp.lt.s32.totalorder %s765_s22, %s765_s22 }
  0x2c   :  { %p772_p8 = por %p771_p7, %p770_p6 }
  0x2e   :  { %p773_p9 = pnand %p772_p8, %p766_p5 }
  0x30   :  { %776 = shalt.err (!%p773_p9)
}
  0x31   :  { %s808_s0 = smov 64   ;;  %s809_s18 = smov 4  }
  0x32   :  { %43 = dma.hbm_to_vmem [thread:$0]  %s919_s2, 4096, %s38_s13, [#allocation6], %s808_s0, %s808_s0, %s809_s18  }
  0x33   :  { %799 = dma.done.wait [#allocation3], 64  }
  0x34   :  { %800 = vsyncadd [#allocation3], 4294967232 }
  0x35   :  { %801 = dma.done.wait [#allocation6], 4224  }
  0x36   :  { %802 = vsyncadd [#allocation6], 4294963072  ;;  %v810_v0 = vmov 0   ;;  %v57_v1 = vld [vmem:[#allocation5] sm:$0xff]  ;;  %vm79_vm0 = vcmask 1043456   ;;  %v679_v4 = vld [vmem:[#allocation7 + $0x40] sm:$0xff]   ;;  %v60_v29 = vlaneseq }
  0x37   :  { %118 = vmatprep.mubr.bf16.mxu0 %v810_v0  ;;  %v550_v2 = vcombine.high %v57_v1, %v57_v1  ;;  %v549_v3 = vcombine.low %v57_v1, %v57_v1  ;;  %v56_v5 = vld [vmem:[#allocation2] sm:$0xf]  ;;  %v680_v6 = vld [vmem:[#allocation7] sm:$0xff]   ;;  %588 = vmatprep.subr.bf16.mxu1 %v679_v4  ;;  %v681_v8 = vld [vmem:[#allocation7 + $0x48] sm:$0xff]   ;;  %vm75_vm1 = vcmask 64512   ;;  %v811_v23 = vmov 0.0  }
  0x38   :  { %589 = vmatpush3.bf16.msra.mxu1 %v680_v6  ;;  %v682_v9 = vld [vmem:[#allocation7 + $0x8] sm:$0xff]   ;;  %v683_v10 = vld [vmem:[#allocation7 + $0x50] sm:$0xff]   ;;  %v685_v12 = vld [vmem:[#allocation7 + $0x58] sm:$0xff]   ;;  %v61_v30 = vshrl.u32 %v60_v29, 7  ;;  %vm812_vm2 = vmmov 0   ;;  %s813_s6 = smov [#allocation8]  }
  0x39   :  { %551 = vmatprep.subr.msk.bf16.mxu0 %vm79_vm0, %v550_v2  ;;  %v81_v7 = vsel %vm79_vm0, %v549_v3, 0  ;;  %590 = vmatprep.subr.bf16.mxu1 %v681_v8  ;;  %v684_v11 = vld [vmem:[#allocation7 + $0x10] sm:$0xff]   ;;  %v686_v13 = vld [vmem:[#allocation7 + $0x18] sm:$0xff]   ;;  %v687_v14 = vld [vmem:[#allocation7 + $0x60] sm:$0xff]   ;;  %s539_s7 = sshll.u32 %s813_s6, 4  ;;  %s540_s7 = int_to_ptr.vmem [resolvable:$true] %s539_s7 }
  0x3a   :  { %87 = vmatpush1.bf16.msra.mxu0 %v81_v7  ;;  %v688_v15 = vld [vmem:[#allocation7 + $0x20] sm:$0xff]   ;;  %v689_v16 = vld [vmem:[#allocation7 + $0x68] sm:$0xff]   ;;  %v691_v18 = vld [vmem:[#allocation7 + $0x70] sm:$0xff]   ;;  %v62_v31 = vsub.s32 0, %v61_v30  ;;  %v66_v33 = vsub.s32 1, %v61_v30  ;;  %s777_s8 = scalar_lea.vmem %s540_s7, 128  ;;  %p782_p11 = scmp.lt.s32.totalorder %s540_s7, %s540_s7 }
  0x3b   :  { %v690_v17 = vld [vmem:[#allocation7 + $0x28] sm:$0xff]   ;;  %v692_v19 = vld [vmem:[#allocation7 + $0x30] sm:$0xff]   ;;  %v693_v20 = vld [vmem:[#allocation7 + $0x78] sm:$0xff]   ;;  %628 = vmatprep.subr.bf16.mxu0 %v811_v23  ;;  %p778_p10 = scmp.ne.s32.totalorder %s540_s7, %s777_s8  ;;  %p783_p12 = scmp.lt.s32.totalorder %s777_s8, %s777_s8 }
  0x3c   :  { %591 = vmatpush3.bf16.msra.mxu1 %v682_v9  ;;  %v694_v21 = vld [vmem:[#allocation7 + $0x38] sm:$0xff]   ;;  %v695_v22 = vld [vmem:[#allocation7 + $0x80] sm:$0xff]   ;;  %v696_v24 = vld [vmem:[#allocation7 + $0x88] sm:$0xff]  }
  0x3d   :  { %552 = vmatmul.mubr.msk.bf16.vlgmr.msra.gmra.mrb[0].mxu0 %vm75_vm1, %v56_v5  ;;  %592 = vmatprep.subr.bf16.mxu1 %v683_v10  ;;  %v697_v25 = vld [vmem:[#allocation7 + $0x90] sm:$0xff]   ;;  %v698_v26 = vld [vmem:[#allocation7 + $0x98] sm:$0xff]   ;;  %v699_v27 = vld [vmem:[#allocation7 + $0xa0] sm:$0xff]   ;;  %p784_p13 = por %p783_p12, %p782_p11 }
  0x3e   :  { %629 = vmatpush3.bf16.msra.mxu0 %v695_v22  ;;  %v700_v28 = vld [vmem:[#allocation7 + $0xa8] sm:$0xff]   ;;  %v701_v46 = vld [vmem:[#allocation7 + $0xb0] sm:$0xff]   ;;  %v702_v47 = vld [vmem:[#allocation7 + $0xb8] sm:$0xff]   ;;  %644 = vmatprep.mubr.msk.bf16.mxu0 %vm812_vm2, %v811_v23 }
  0x3f   :  { %630 = vmatprep.subr.bf16.mxu0 %v811_v23  ;;  %v58_v32 = vld [vmem:[%s920_s3] sm:$0x3]  ;;  %v703_v48 = vld [vmem:[#allocation7 + $0xc0] sm:$0xff]   ;;  %v705_v50 = vld [vmem:[#allocation7 + $0xd0] sm:$0xff]   ;;  %p785_p0 = pnand %p784_p13, %p778_p10 }
  0x40   :  { %593 = vmatpush3.bf16.msra.mxu1 %v684_v11  ;;  %v63_v34 = vrot.slane %v58_v32, %v62_v31  ;;  %v67_v35 = vrot.slane %v58_v32, %v66_v33  ;;  %v704_v49 = vld [vmem:[#allocation7 + $0xc8] sm:$0xff]   ;;  %v706_v51 = vld [vmem:[#allocation7 + $0xd8] sm:$0xff]   ;;  %v707_v52 = vld [vmem:[#allocation7 + $0xe0] sm:$0xff]  }
  0x41   :  { %594 = vmatprep.subr.bf16.mxu1 %v685_v12  ;;  %v708_v53 = vld [vmem:[#allocation7 + $0xe8] sm:$0xff]   ;;  %v709_v63 = vld [vmem:[#allocation7 + $0xf0] sm:$0xff]   ;;  %v710_v0 = vld [vmem:[#allocation7 + $0xf8] sm:$0xff]  }
  0x42   :  { %631 = vmatpush3.bf16.msra.mxu0 %v696_v24  ;;  %v553_v55 = vld [vmem:[%s920_s3 + $0x2] ss:$0 sm:$0xff]  ;;  %v570_v1 = vld [vmem:[%s920_s3 + $0x3] ss:$0 sm:$0xff]  ;;  %v579_v9 = vld [vmem:[%s920_s3 + $0x4] ss:$0 sm:$0xff] }
  0x43   :  { %632 = vmatprep.subr.bf16.mxu0 %v811_v23 }
  0x44   :  { %595 = vmatpush3.bf16.msra.mxu1 %v686_v13 }
  0x45   :  { %596 = vmatprep.subr.bf16.mxu1 %v687_v14 }
  0x46   :  { %633 = vmatpush3.bf16.msra.mxu0 %v697_v25 }
  0x47   :  { %634 = vmatprep.subr.bf16.mxu0 %v811_v23 }
  0x48   :  { %597 = vmatpush3.bf16.msra.mxu1 %v688_v15 }
  0x49   :  { %598 = vmatprep.subr.bf16.mxu1 %v689_v16 }
  0x4a   :  { %635 = vmatpush3.bf16.msra.mxu0 %v698_v26 }
  0x4b   :  { %636 = vmatprep.subr.bf16.mxu0 %v811_v23 }
  0x4c   :  { %599 = vmatpush3.bf16.msra.mxu1 %v690_v17 }
  0x4d   :  { %600 = vmatprep.subr.bf16.mxu1 %v691_v18 }
  0x4e   :  { %637 = vmatpush3.bf16.msra.mxu0 %v699_v27 }
  0x4f   :  { %638 = vmatprep.subr.bf16.mxu0 %v811_v23 }
  0x50   :  { %601 = vmatpush3.bf16.msra.mxu1 %v692_v19 }
  0x51   :  { %602 = vmatprep.subr.bf16.mxu1 %v693_v20 }
  0x52   :  { %639 = vmatpush3.bf16.msra.mxu0 %v700_v28 }
  0x53   :  { %640 = vmatprep.subr.bf16.mxu0 %v811_v23 }
  0x54   :  { %603 = vmatpush3.bf16.msra.mxu1 %v694_v21 }
  0x55   :  { %648 = vmatprep.subr.bf16.mxu1 %v811_v23 }
  0x56   :  { %641 = vmatpush3.bf16.msra.mxu0 %v701_v46 }
  0x57   :  { %642 = vmatprep.subr.bf16.mxu0 %v811_v23 }
  0x5a   :  { %643 = vmatpush3.bf16.msra.mxu0 %v702_v47 }
 0x110   :  { %v120_v36 = vpop.f32.mrb[0].mxu0 }
 0x111   :  { %v121_v37 = vadd.f32 %v120_v36, %v63_v34  ;;  %v122_v38 = vpop.f32.mrb[1].mxu0 }
 0x112   :  { %v123_v39 = vadd.f32 %v122_v38, %v67_v35  ;;  %v124_v40 = vpop.f32.mrb[2].mxu0 }
 0x113   :  { %v127_v41 = vmax.f32 %v121_v37, 0.0  ;;  %v125_v42 = vpop.f32.mrb[3].mxu0 }
 0x114   :  { %v128_v43 = vmax.f32 %v123_v39, 0.0 }
 0x115   :  { %v129_v45 = vpack.c.bf16 %v127_v41, %v127_v41 }
 0x116   :  { %v130_v44 = vpack.c.bf16 %v128_v43, %v128_v43 }
 0x118   :  { %298 = vmatprep.mubr.bf16.mxu1 %v130_v44 }
 0x119   :  { %299 = vmatmul.mubr.bf16.vlgmr.msra.gmra.mrb[0].mxu1 %v129_v45 }
 0x11a   :  { %664 = vmatprep.mubr.msk.bf16.mxu1 %vm812_vm2, %v811_v23  ;;  %649 = vmatpush3.bf16.msra.mxu1 %v703_v48 }
 0x11b   :  { %650 = vmatprep.subr.bf16.mxu1 %v811_v23 }
 0x11e   :  { %651 = vmatpush3.bf16.msra.mxu1 %v704_v49 }
 0x11f   :  { %652 = vmatprep.subr.bf16.mxu1 %v811_v23 }
 0x122   :  { %653 = vmatpush3.bf16.msra.mxu1 %v705_v50 }
 0x123   :  { %654 = vmatprep.subr.bf16.mxu1 %v811_v23 }
 0x126   :  { %655 = vmatpush3.bf16.msra.mxu1 %v706_v51 }
 0x127   :  { %656 = vmatprep.subr.bf16.mxu1 %v811_v23 }
 0x12a   :  { %657 = vmatpush3.bf16.msra.mxu1 %v707_v52 }
 0x12b   :  { %658 = vmatprep.subr.bf16.mxu1 %v811_v23 }
 0x12e   :  { %659 = vmatpush3.bf16.msra.mxu1 %v708_v53 }
 0x12f   :  { %660 = vmatprep.subr.bf16.mxu1 %v811_v23 }
 0x132   :  { %661 = vmatpush3.bf16.msra.mxu1 %v709_v63 }
 0x133   :  { %662 = vmatprep.subr.bf16.mxu1 %v811_v23 }
 0x136   :  { %663 = vmatpush3.bf16.msra.mxu1 %v710_v0 }
 0x1ec   :  { %v604_v54 = vpop.f32.mrb[0].mxu1 }
 0x1ed   :  { %v605_v56 = vpop.f32.mrb[1].mxu1 }
 0x1ee   :  { %v606_v57 = vadd.f32 %v605_v56, %v604_v54  ;;  %v607_v58 = vpop.f32.mrb[2].mxu1 }
 0x1ef   :  { %v608_v59 = vpop.f32.mrb[3].mxu1 }
 0x1f0   :  { %v301_v60 = vadd.f32 %v606_v57, %v553_v55 }
 0x1f2   :  { %v306_v61 = vmax.f32 %v301_v60, 0.0 }
 0x1f4   :  { %v307_v62 = vpack.c.bf16 %v306_v61, %v306_v61 }
 0x1f6   :  { %645 = vmatmul.mubr.bf16.vlgmr.msra.gmra.mrb[4].mxu0 %v307_v62 }
 0x2c9   :  { %v413_v2 = vpop.f32.mrb[4].mxu0 }
 0x2ca   :  { %v414_v3 = vadd.f32 %v570_v1, %v413_v2  ;;  %v646_v4 = vpop.f32.mrb[5].mxu0 }
 0x2cb   :  { %v416_v5 = vpop.f32.mrb[6].mxu0 }
 0x2cc   :  { %v419_v6 = vmax.f32 %v414_v3, 0.0  ;;  %v647_v7 = vpop.f32.mrb[7].mxu0 }
 0x2ce   :  { %v420_v8 = vpack.c.bf16 %v419_v6, %v419_v6 }
 0x2d0   :  { %665 = vmatmul.mubr.bf16.vlgmr.msra.gmra.mrb[4].mxu1 %v420_v8 }
 0x3a3   :  { %v526_v10 = vpop.f32.mrb[4].mxu1 }
 0x3a4   :  { %v527_v11 = vadd.f32 %v579_v9, %v526_v10  ;;  %v666_v12 = vpop.f32.mrb[5].mxu1 }
 0x3a5   :  { %v529_v13 = vpop.f32.mrb[6].mxu1 }
 0x3a6   :  { %532 = vst [vmem:[#allocation8] sm:$0xff] %v527_v11  ;;  %v667_v14 = vpop.f32.mrb[7].mxu1 }
 0x3a7   :  { %788 = shalt.err (!%p785_p0)
}
 0x3a8   :  { %s789_s3 = scalar_lea.hbm %s921_s4, 128 }
 0x3a9   :  { %p790_p1 = scmp.ne.s32.totalorder %s921_s4, %s789_s3  ;;  %p793_p2 = scmp.lt.u32.totalorder %s789_s3, %s921_s4 }
 0x3ab   :  { %p795_p3 = pnand %p793_p2, %p790_p1 }
 0x3ad   :  { %798 = shalt.err (!%p795_p3)
}
 0x3ae   :  { %542 = dma.vmem_to_hbm [thread:$0]  %s540_s7, 128, %s921_s4, [#allocation4]  }
 0x3af   :  { %803 = dma.done.wait [#allocation4], 128  }
 0x3b0   :  { %804 = vsyncadd [#allocation4], 4294967168 }
 0x3b1   :  { %546 = vsyncpa [#allocation3], 1 }
 0x3b2   :  { %547 = vsyncpa [#allocation6], 1 }
 0x3b3   :  { %548 = vsyncpa [#allocation4], 1 }

</bundles_post_ra>
